<compile_context>
chip_gen: v7x
topology: tpu7x:2x2x1
jax: 0.10.0
libtpu: 0.0.40
codegen_flags: <defaults>
</compile_context>

<pallas_src>
import math

import jax
import jax.numpy as jnp
from jax.experimental import pallas as pl
from jax.experimental.pallas import tpu as pltpu


_LANE = 128


def _round_up(x, m):
    return ((x + m - 1) // m) * m


def _cdiv(a, b):
    return (a + b - 1) // b


def _vmem_budget_bytes():
    """~85% of physical VMEM (v5e/v6e: ~108 MiB, v7x: ~54 MiB).

    Falls back to a conservative v7x-sized budget if the query fails."""
    cap = 64 * 1024 * 1024
    try:
        cap = int(pltpu.get_tpu_info().vmem_capacity_bytes)
    except Exception:
        pass
    return int(cap * 0.85)


def _block(shape, index_map, single_buffer=False):
    if single_buffer:
        return pl.BlockSpec(shape, index_map, pipeline_mode=pl.Buffered(1))
    return pl.BlockSpec(shape, index_map)


def _make_fused_mlp_kernel(num_layers, cdtype):
    """kernel(x, w0, b0, ..., w_{L-1}, b_{L-1}, o, hpre_scratch).

    Layers 0..L-2 run once per batch tile (at n-tile index 0); the pre-final
    activation is cached in VMEM scratch and the final layer is applied per
    output (N) tile.  Dots take storage-dtype operands with f32 accumulation;
    tanh runs on the storage dtype (bf16 on v6e/v7x, f32 when dtype is f32)."""

    def kernel(x_ref, *refs):
        o_ref = refs[2 * num_layers]
        hpre_ref = refs[2 * num_layers + 1]
        j = pl.program_id(1)

        @pl.when(j == 0)
        def _():
            h = x_ref[...]
            for li in range(num_layers - 1):      # static unroll; stays in VMEM/vregs
                w = refs[2 * li][...]
                b = refs[2 * li + 1][...]
                acc = jnp.dot(h, w, preferred_element_type=jnp.float32)
                h = jnp.tanh((acc + b).astype(cdtype))
            hpre_ref[...] = h.astype(cdtype)

        w = refs[2 * (num_layers - 1)][...]
        b = refs[2 * (num_layers - 1) + 1][...]
        acc = jnp.dot(hpre_ref[...], w, preferred_element_type=jnp.float32)
        o_ref[...] = jnp.tanh((acc + b).astype(cdtype)).astype(o_ref.dtype)

    return kernel


def fused_mlp(x, padded_params, out_features, *, tile_b_target=512,
              max_tile_n=None):
    """x: (B, D_in) unpadded. padded_params: [(w_p, b_p)] lane-padded to 128.

    Returns tanh-stack output of shape (B, out_features)."""
    B, D_in = x.shape
    num_layers = len(padded_params)
    dtype = x.dtype
    itemsize = jnp.dtype(dtype).itemsize
    din_p = padded_params[0][0].shape[0]
    dpre_p = padded_params[-1][0].shape[0]     # input width of the final layer
    dout_p = padded_params[-1][0].shape[1]

    # --- batch tiling: packed-sublane row alignment, bounded padding ---------
    row_align = max(8, 32 // itemsize)         # 8 (f32) / 16 (bf16) / 32 (int8)
    target = max(int(tile_b_target), row_align)
    n_btiles = max(1, _cdiv(B, target))
    tile_b = _round_up(_cdiv(B, n_btiles), row_align)
    Bp = tile_b * n_btiles

    # --- output (N) tiling: resident final weight when it fits, else tile ----
    budget = _vmem_budget_bytes()
    inter_bytes = sum(w.size + b.size for w, b in padded_params[:-1]) * itemsize
    max_width = max([din_p] + [int(w.shape[1]) for w, _ in padded_params])

    def vmem_needed(tn):
        n = 2 * tile_b * din_p * itemsize                  # x (double buffered)
        n += inter_bytes                                   # resident intermediates (1x)
        n += 2 * (dpre_p * tn + tn) * itemsize             # final-layer w/b tiles
        n += 2 * tile_b * tn * itemsize                    # output tiles
        n += tile_b * dpre_p * itemsize                    # h_pre scratch
        n += 2 * tile_b * max_width * 4                    # f32 accumulators/temps
        return n

    tile_n = dout_p
    if max_tile_n is not None:
        tile_n = min(tile_n, _round_up(int(max_tile_n), _LANE))
    while tile_n > _LANE and vmem_needed(tile_n) > budget:
        tile_n = _round_up(tile_n // 2, _LANE)
    n_ntiles = _cdiv(dout_p, tile_n)
    dout_pp = tile_n * n_ntiles

    # Re-pad the final layer so dout is a multiple of tile_n (zero columns
    # stay zero through tanh(0)=0 and are sliced off at the end).
    w_last, b_last = padded_params[-1]
    if dout_pp != dout_p:
        w_last = jnp.zeros((dpre_p, dout_pp), dtype).at[:, :dout_p].set(w_last)
        b_last = jnp.zeros((1, dout_pp), dtype).at[:, :dout_p].set(b_last)
    params = list(padded_params[:-1]) + [(w_last, b_last)]

    # Zero-pad input once (batch rows + input lanes).  Padding lanes stay zero
    # through the stack because padded weight rows/cols and biases are zero.
    x_p = jnp.zeros((Bp, din_p), dtype).at[:B, :D_in].set(x)

    flat_wb = []
    in_specs = [pl.BlockSpec((tile_b, din_p), lambda i, j: (i, 0))]
    for li, (w, b) in enumerate(params):
        flat_wb += [w, b]
        if li < num_layers - 1:
            # Resident for the whole grid; never re-fetched -> single buffer.
            in_specs.append(_block(w.shape, lambda i, j: (0, 0), single_buffer=True))
            in_specs.append(_block(b.shape, lambda i, j: (0, 0), single_buffer=True))
        else:
            sb = (n_ntiles == 1)   # constant index -> single buffer; else pipeline
            in_specs.append(_block((dpre_p, tile_n), lambda i, j: (0, j), single_buffer=sb))
            in_specs.append(_block((1, tile_n), lambda i, j: (0, j), single_buffer=sb))
    out_specs = pl.BlockSpec((tile_b, tile_n), lambda i, j: (i, j))

    # Advisory cost estimate for XLA's scheduler.
    flops = 2 * Bp * sum(int(w.shape[0]) * int(w.shape[1]) for w, _ in params)
    transc = Bp * sum(int(w.shape[1]) for w, _ in params)
    bytes_accessed = (x_p.size * itemsize
                      + sum(w.size + b.size for w, b in params) * itemsize
                      + Bp * dout_pp * itemsize)

    needed = vmem_needed(tile_n)
    vmem_limit = int(min(max(int(1.5 * needed), 32 * 1024 * 1024), budget))

    out_p = pl.pallas_call(
        _make_fused_mlp_kernel(num_layers, dtype),
        out_shape=jax.ShapeDtypeStruct((Bp, dout_pp), dtype),
        grid_spec=pltpu.PrefetchScalarGridSpec(
            num_scalar_prefetch=0,
            grid=(n_btiles, n_ntiles),
            in_specs=in_specs,
            out_specs=out_specs,
            scratch_shapes=[pltpu.VMEM((tile_b, dpre_p), dtype)],
        ),
        compiler_params=pltpu.CompilerParams(
            dimension_semantics=("parallel", "arbitrary"),
            vmem_limit_bytes=vmem_limit,
        ),
        cost_estimate=pl.CostEstimate(
            flops=int(flops),
            transcendentals=int(transc),
            bytes_accessed=int(bytes_accessed),
        ),
    )(x_p, *flat_wb)

    return out_p[:B, :out_features]


class FeedForward:
    """JAX/Pallas port of the PyTorch FeedForward module (Linear+Tanh stack).

    Weights are stored in `dtype` (default bf16 for full-rate MXU and half the
    weight HBM/VMEM traffic); accumulation is always f32 inside the kernel."""

    def __init__(self, input_size, output_size, num_layers=1,
                 hidden_size=None, bias=True, key=None, dtype=jnp.bfloat16):
        if key is None:
            key = jax.random.PRNGKey(0)
        if hidden_size is None:
            hidden_size = input_size
        n_inputs = [input_size] + [hidden_size] * (num_layers - 1)
        n_outputs = [hidden_size] * (num_layers - 1) + [output_size]
        self.output_size = output_size
        self.dtype = jnp.dtype(dtype)
        self.params = []          # storage-dtype (in, out) weights — reference/export
        self.padded_params = []   # lane-padded to multiples of 128 — kernel use
        for n_in, n_out in zip(n_inputs, n_outputs):
            key, kw, kb = jax.random.split(key, 3)
            bound = 1.0 / math.sqrt(n_in)   # PyTorch nn.Linear default init range
            w = jax.random.uniform(kw, (n_in, n_out), jnp.float32,
                                   -bound, bound).astype(self.dtype)
            if bias:
                b = jax.random.uniform(kb, (n_out,), jnp.float32,
                                       -bound, bound).astype(self.dtype)
            else:
                b = jnp.zeros((n_out,), self.dtype)
            self.params.append((w, b))
            n_in_p = _round_up(n_in, _LANE)
            n_out_p = _round_up(n_out, _LANE)
            w_p = jnp.zeros((n_in_p, n_out_p), self.dtype).at[:n_in, :n_out].set(w)
            b_p = jnp.zeros((1, n_out_p), self.dtype).at[0, :n_out].set(b)
            self.padded_params.append((w_p, b_p))

    def __call__(self, x, **kwargs):
        # Accepts (..., input_size); flatten leading dims for the kernel.
        lead = x.shape[:-1]
        h = x.reshape(-1, x.shape[-1]).astype(self.dtype)
        out = fused_mlp(h, self.padded_params, self.output_size, **kwargs)
        return out.reshape(*lead, self.output_size)


def _reference(x, params):
    """Pure-JAX f32 reference over the (storage-dtype) weights."""
    h = x.reshape(-1, x.shape[-1]).astype(jnp.float32)
    for w, b in params:
        h = jnp.tanh(h @ w.astype(jnp.float32) + b.astype(jnp.float32))
    return h.reshape(*x.shape[:-1], h.shape[-1])


if __name__ == "__main__":
    key = jax.random.PRNGKey(0)
    kx1, kp1, kx2, kp2, kx3, kp3 = jax.random.split(key, 6)

    # --- Test A: f32 path, fully-resident weights (NT == 1), tight tolerance.
    batch, d_in, d_h, d_out, n_layers = 8, 32, 64, 16, 2
    x = jax.random.normal(kx1, (batch, d_in), jnp.float32)
    ff = FeedForward(d_in, d_out, num_layers=n_layers, hidden_size=d_h,
                     bias=True, key=kp1, dtype=jnp.float32)
    out = jax.block_until_ready(ff(x))
    ref = _reference(x, ff.params)
    assert out.shape == (batch, d_out)
    assert jnp.allclose(out, ref, atol=1e-5, rtol=1e-5), "f32 path mismatch"

    # --- Test B: bf16 MXU path with forced output (N) tiling + multiple batch
    #     tiles (exercises the VMEM scratch reuse across the N axis).
    batch, d_in, d_h, d_out, n_layers = 20, 48, 96, 300, 2
    x = jax.random.normal(kx2, (batch, d_in), jnp.float32)
    ff = FeedForward(d_in, d_out, num_layers=n_layers, hidden_size=d_h,
                     bias=True, key=kp2, dtype=jnp.bfloat16)
    out = jax.block_until_ready(ff(x, tile_b_target=8, max_tile_n=128))
    ref = _reference(x.astype(jnp.bfloat16), ff.params)
    assert out.shape == (batch, d_out)
    assert jnp.allclose(out.astype(jnp.float32), ref, atol=5e-2, rtol=5e-2), \
        "bf16 N-tiled path mismatch"

    # --- Test C: single layer, bf16, N-tiled (pre-final activation == input).
    batch, d_in, d_out = 6, 40, 260
    x = jax.random.normal(kx3, (batch, d_in), jnp.float32)
    ff = FeedForward(d_in, d_out, num_layers=1, bias=True, key=kp3,
                     dtype=jnp.bfloat16)
    out = jax.block_until_ready(ff(x, max_tile_n=128))
    ref = _reference(x.astype(jnp.bfloat16), ff.params)
    assert out.shape == (batch, d_out)
    assert jnp.allclose(out.astype(jnp.float32), ref, atol=5e-2, rtol=5e-2), \
        "bf16 single-layer path mismatch"

    print("KERNEL_OK")
</pallas_src>

<mosaic_0001>
module attributes {stable_mosaic.version = 11 : i64} {
  func.func @kernel(%arg0: i32, %arg1: i32, %arg2: memref<8x128xf32, #tpu.memory_space<vmem>>, %arg3: memref<128x128xf32, #tpu.memory_space<vmem>>, %arg4: memref<1x128xf32, #tpu.memory_space<vmem>>, %arg5: memref<128x128xf32, #tpu.memory_space<vmem>>, %arg6: memref<1x128xf32, #tpu.memory_space<vmem>>, %arg7: memref<8x128xf32, #tpu.memory_space<vmem>>, %arg8: memref<8x128xf32, #tpu.memory_space<vmem>>) attributes {dimension_semantics = [#tpu.dimension_semantics<parallel>, #tpu.dimension_semantics<arbitrary>], iteration_bounds = array<i64: 1, 1>, scalar_prefetch = 0 : i64, scratch_operands = 1 : i64, tpu.core_type = #tpu.core_type<tc>, window_params = [{transform_indices = @transform_0, window_bounds = array<i64: 8, 128>}, {pipeline_mode = #tpu.pipeline_mode<synchronous>, transform_indices = @transform_1, window_bounds = array<i64: 128, 128>}, {pipeline_mode = #tpu.pipeline_mode<synchronous>, transform_indices = @transform_2, window_bounds = array<i64: 1, 128>}, {pipeline_mode = #tpu.pipeline_mode<synchronous>, transform_indices = @transform_3, window_bounds = array<i64: 128, 128>}, {pipeline_mode = #tpu.pipeline_mode<synchronous>, transform_indices = @transform_4, window_bounds = array<i64: 1, 128>}, {transform_indices = @transform_5, window_bounds = array<i64: 8, 128>}]} {
    %c0_i32 = arith.constant 0 : i32
    %0 = arith.cmpi eq, %arg1, %c0_i32 : i32
    %1 = arith.extui %0 : i1 to i32
    %c0_i32_0 = arith.constant 0 : i32
    %2 = arith.cmpi ne, %1, %c0_i32_0 : i32
    scf.if %2 {
      %c0_8 = arith.constant 0 : index
      %c0_9 = arith.constant 0 : index
      %11 = vector.load %arg2[%c0_8, %c0_9] : memref<8x128xf32, #tpu.memory_space<vmem>>, vector<8x128xf32>
      %c0_10 = arith.constant 0 : index
      %c0_11 = arith.constant 0 : index
      %12 = vector.load %arg3[%c0_10, %c0_11] : memref<128x128xf32, #tpu.memory_space<vmem>>, vector<128x128xf32>
      %c0_12 = arith.constant 0 : index
      %c0_13 = arith.constant 0 : index
      %13 = vector.load %arg4[%c0_12, %c0_13] : memref<1x128xf32, #tpu.memory_space<vmem>>, vector<1x128xf32>
      %cst_14 = arith.constant dense<0.000000e+00> : vector<8x128xf32>
      %14 = tpu.matmul %11, %12, %cst_14 {dimension_numbers = #tpu.dot_dimension_numbers<[1], [0], [0], [1], [0, 0, 1, 1], [], []>} : vector<8x128xf32>, vector<128x128xf32>, vector<8x128xf32> -> vector<8x128xf32>
      %15 = vector.broadcast %13 : vector<1x128xf32> to vector<8x128xf32>
      %16 = arith.addf %14, %15 : vector<8x128xf32>
      %17 = math.tanh %16 : vector<8x128xf32>
      %c0_15 = arith.constant 0 : index
      %c0_16 = arith.constant 0 : index
      %18 = vector.load %arg8[%c0_15, %c0_16] : memref<8x128xf32, #tpu.memory_space<vmem>>, vector<8x128xf32>
      tpu.vector_store %arg8[%c0_15, %c0_16], %17 {strides = array<i32>} : memref<8x128xf32, #tpu.memory_space<vmem>>, vector<8x128xf32>,
    } else {
    }
    %c0 = arith.constant 0 : index
    %c0_1 = arith.constant 0 : index
    %3 = vector.load %arg5[%c0, %c0_1] : memref<128x128xf32, #tpu.memory_space<vmem>>, vector<128x128xf32>
    %c0_2 = arith.constant 0 : index
    %c0_3 = arith.constant 0 : index
    %4 = vector.load %arg6[%c0_2, %c0_3] : memref<1x128xf32, #tpu.memory_space<vmem>>, vector<1x128xf32>
    %c0_4 = arith.constant 0 : index
    %c0_5 = arith.constant 0 : index
    %5 = vector.load %arg8[%c0_4, %c0_5] : memref<8x128xf32, #tpu.memory_space<vmem>>, vector<8x128xf32>
    %cst = arith.constant dense<0.000000e+00> : vector<8x128xf32>
    %6 = tpu.matmul %5, %3, %cst {dimension_numbers = #tpu.dot_dimension_numbers<[1], [0], [0], [1], [0, 0, 1, 1], [], []>} : vector<8x128xf32>, vector<128x128xf32>, vector<8x128xf32> -> vector<8x128xf32>
    %7 = vector.broadcast %4 : vector<1x128xf32> to vector<8x128xf32>
    %8 = arith.addf %6, %7 : vector<8x128xf32>
    %9 = math.tanh %8 : vector<8x128xf32>
    %c0_6 = arith.constant 0 : index
    %c0_7 = arith.constant 0 : index
    %10 = vector.load %arg7[%c0_6, %c0_7] : memref<8x128xf32, #tpu.memory_space<vmem>>, vector<8x128xf32>
    tpu.vector_store %arg7[%c0_6, %c0_7], %9 {strides = array<i32>} : memref<8x128xf32, #tpu.memory_space<vmem>>, vector<8x128xf32>,
    return
  }
  func.func @transform_0(%arg0: i32, %arg1: i32) -> (i32, i32) {
    %c0_i32 = arith.constant 0 : i32
    %c0_i32_0 = arith.constant 0 : i32
    return %arg0, %c0_i32 : i32, i32
  }
  func.func @transform_1(%arg0: i32, %arg1: i32) -> (i32, i32) {
    %c0_i32 = arith.constant 0 : i32
    %c0_i32_0 = arith.constant 0 : i32
    %c0_i32_1 = arith.constant 0 : i32
    return %c0_i32, %c0_i32_0 : i32, i32
  }
  func.func @transform_2(%arg0: i32, %arg1: i32) -> (i32, i32) {
    %c0_i32 = arith.constant 0 : i32
    %c0_i32_0 = arith.constant 0 : i32
    %c0_i32_1 = arith.constant 0 : i32
    return %c0_i32, %c0_i32_0 : i32, i32
  }
  func.func @transform_3(%arg0: i32, %arg1: i32) -> (i32, i32) {
    %c0_i32 = arith.constant 0 : i32
    %c0_i32_0 = arith.constant 0 : i32
    return %c0_i32, %arg1 : i32, i32
  }
  func.func @transform_4(%arg0: i32, %arg1: i32) -> (i32, i32) {
    %c0_i32 = arith.constant 0 : i32
    %c0_i32_0 = arith.constant 0 : i32
    return %c0_i32, %arg1 : i32, i32
  }
  func.func @transform_5(%arg0: i32, %arg1: i32) -> (i32, i32) {
    %c0_i32 = arith.constant 0 : i32
    return %arg0, %arg1 : i32, i32
  }
}

</mosaic_0001>

<bundles_post_ra>
// kernel: tpu_custom_call.1
= control target key start
LH: loop header
LB: loop body
LE: loop exit
PB: predicated region body
PF: predicated region fallthrough
CT: control target
= control target key end

     0   :  { %10 = vsyncpa [#allocation4], 0  ;;  %s648_s0 = inlined_call_operand.hbm [shape: f32[8,128], index: 0, kind: input, shape index: {}]   ;;  %s649_s1 = inlined_call_operand.hbm [shape: f32[128,128], index: 1, kind: input, shape index: {}]   ;;  %s650_s2 = inlined_call_operand.vmem [shape: f32[1,128], index: 2, kind: input, shape index: {}]   ;;  %s651_s3 = inlined_call_operand.hbm [shape: f32[128,128], index: 3, kind: input, shape index: {}]   ;;  %s652_s4 = inlined_call_operand.vmem [shape: f32[1,128], index: 4, kind: input, shape index: {}]   ;;  %s653_s5 = inlined_call_operand.hbm [shape: f32[8,128], index: 5, kind: output, shape index: {}]  }
   0x1   :  { %11 = vsyncpa [#allocation7], 0 }
   0x2   :  { %12 = vsyncpa [#allocation5], 0  ;;  %s533_s18 = smov [#allocation6]   ;;  %s439_s22 = scalar_lea.hbm %s649_s1, 2048 }
   0x3   :  { %s28_s19 = sshll.u32 %s533_s18, 4  ;;  %p440_p0 = scmp.ne.s32.totalorder %s649_s1, %s439_s22  ;;  %s29_s19 = int_to_ptr.vmem [resolvable:$true] %s28_s19 }
   0x4   :  { %p443_p1 = scmp.lt.u32.totalorder %s439_s22, %s649_s1 }
   0x6   :  { %p445_p2 = pnand %p443_p1, %p440_p0 }
   0x8   :  { %448 = shalt.err (!%p445_p2)
}
   0x9   :  { %s449_s27 = scalar_lea.vmem %s29_s19, 2048  ;;  %p454_p4 = scmp.lt.s32.totalorder %s29_s19, %s29_s19 }
   0xa   :  { %p450_p3 = scmp.ne.s32.totalorder %s29_s19, %s449_s27  ;;  %p455_p5 = scmp.lt.s32.totalorder %s449_s27, %s449_s27 }
   0xc   :  { %p456_p6 = por %p455_p5, %p454_p4 }
   0xe   :  { %p457_p7 = pnand %p456_p6, %p450_p3 }
  0x10   :  { %460 = shalt.err (!%p457_p7)
}
  0x11   :  { %s534_s28 = smov 128   ;;  %s535_s29 = smov 8  }
  0x12   :  { %34 = dma.hbm_to_vmem [thread:$0]  %s649_s1, 2048, %s29_s19, [#allocation7], %s534_s28, %s534_s28, %s535_s29  }
  0x13   :  { %s536_s7 = smov [#allocation3]   ;;  %s537_s9 = smov [#allocation8]  }
  0x14   :  { %s19_s8 = sshll.u32 %s536_s7, 4  ;;  %s42_s10 = sshll.u32 %s537_s9, 4  ;;  %s20_s8 = int_to_ptr.vmem [resolvable:$true] %s19_s8  ;;  %s43_s10 = int_to_ptr.vmem [resolvable:$true] %s42_s10 }
  0x15   :  { %s461_s13 = scalar_lea.hbm %s648_s0, 128 }
  0x16   :  { %p462_p8 = scmp.ne.s32.totalorder %s648_s0, %s461_s13  ;;  %p465_p9 = scmp.lt.u32.totalorder %s461_s13, %s648_s0 }
  0x18   :  { %p467_p10 = pnand %p465_p9, %p462_p8 }
  0x1a   :  { %470 = shalt.err (!%p467_p10)
}
  0x1b   :  { %s471_s1 = scalar_lea.vmem %s20_s8, 128  ;;  %p476_p12 = scmp.lt.s32.totalorder %s20_s8, %s20_s8 }
  0x1c   :  { %p472_p11 = scmp.ne.s32.totalorder %s20_s8, %s471_s1  ;;  %p477_p13 = scmp.lt.s32.totalorder %s471_s1, %s471_s1 }
  0x1e   :  { %p478_p0 = por %p477_p13, %p476_p12 }
  0x20   :  { %p479_p1 = pnand %p478_p0, %p472_p11 }
  0x22   :  { %482 = shalt.err (!%p479_p1)
}
  0x23   :  { %22 = dma.hbm_to_vmem [thread:$0]  %s648_s0, 128, %s20_s8, [#allocation4]  }
  0x24   :  { %s483_s22 = scalar_lea.hbm %s651_s3, 2048 }
  0x25   :  { %p484_p2 = scmp.ne.s32.totalorder %s651_s3, %s483_s22  ;;  %p487_p3 = scmp.lt.u32.totalorder %s483_s22, %s651_s3 }
  0x27   :  { %p489_p4 = pnand %p487_p3, %p484_p2 }
  0x29   :  { %492 = shalt.err (!%p489_p4)
}
  0x2a   :  { %s493_s27 = scalar_lea.vmem %s43_s10, 2048  ;;  %p498_p6 = scmp.lt.s32.totalorder %s43_s10, %s43_s10 }
  0x2b   :  { %p494_p5 = scmp.ne.s32.totalorder %s43_s10, %s493_s27  ;;  %p499_p7 = scmp.lt.s32.totalorder %s493_s27, %s493_s27 }
  0x2d   :  { %p500_p8 = por %p499_p7, %p498_p6 }
  0x2f   :  { %p501_p9 = pnand %p500_p8, %p494_p5 }
  0x31   :  { %504 = shalt.err (!%p501_p9)
}
  0x32   :  { %48 = dma.hbm_to_vmem [thread:$0]  %s651_s3, 2048, %s43_s10, [#allocation7], %s534_s28, %s534_s28, %s535_s29  }
  0x33   :  { %527 = dma.done.wait [#allocation4], 128  }
  0x34   :  { %528 = vsyncadd [#allocation4], 4294967168 }
  0x35   :  { %529 = dma.done.wait [#allocation7], 4096  }
  0x36   :  { %530 = vsyncadd [#allocation7], 4294963200  ;;  %v538_v0 = vmov 0.0|0.0   ;;  %vm539_vm0 = vmmov 0   ;;  %v540_v1 = vmov 0.0   ;;  %v65_v2 = vld [vmem:[#allocation6] sm:$0xff] }
  0x37   :  { %378 = vmatprep.subr.bf16.mxu0 %v538_v0  ;;  %340 = vmatprep.mubr.msk.f32.mxu0 %vm539_vm0, %v540_v1  ;;  %v66_v3 = vld [vmem:[#allocation6 + $0x8] sm:$0xff]  ;;  %v67_v4 = vld [vmem:[#allocation6 + $0x10] sm:$0xff]  ;;  %v68_v6 = vld [vmem:[#allocation6 + $0x18] sm:$0xff]  ;;  %s541_s7 = smov [#allocation9]  }
  0x38   :  { %402 = vmatprep.subr.bf16.mxu1 %v538_v0  ;;  %375 = vmatprep.mubr.msk.f32.mxu1 %vm539_vm0, %v540_v1  ;;  %v379_v5 = vpack.c.bf16 %v66_v3, %v65_v2  ;;  %v382_v7 = vpack.c.bf16 %v68_v6, %v67_v4  ;;  %v69_v8 = vld [vmem:[#allocation6 + $0x20] sm:$0xff]  ;;  %v70_v9 = vld [vmem:[#allocation6 + $0x28] sm:$0xff]  ;;  %v162_v12 = vld [vmem:[#allocation8 + $0x10] sm:$0xff]  ;;  %s262_s8 = sshll.u32 %s541_s7, 4  ;;  %s263_s8 = int_to_ptr.vmem [resolvable:$true] %s262_s8 }
  0x39   :  { %v160_v10 = vld [vmem:[#allocation8] sm:$0xff]  ;;  %v161_v11 = vld [vmem:[#allocation8 + $0x8] sm:$0xff]  ;;  %v163_v13 = vld [vmem:[#allocation8 + $0x18] sm:$0xff]  ;;  %v385_v14 = vpack.c.bf16 %v70_v9, %v69_v8  ;;  %p510_p11 = scmp.lt.s32.totalorder %s263_s8, %s263_s8 }
  0x3a   :  { %380 = vmatpush3.bf16.msra.mxu0 %v379_v5  ;;  %v403_v15 = vpack.c.bf16 %v161_v11, %v160_v10  ;;  %v71_v16 = vld [vmem:[#allocation6 + $0x30] sm:$0xff]  ;;  %v72_v17 = vld [vmem:[#allocation6 + $0x38] sm:$0xff]  ;;  %v406_v18 = vpack.c.bf16 %v163_v13, %v162_v12  ;;  %v164_v19 = vld [vmem:[#allocation8 + $0x20] sm:$0xff] }
  0x3b   :  { %381 = vmatprep.subr.bf16.mxu0 %v538_v0  ;;  %v165_v20 = vld [vmem:[#allocation8 + $0x28] sm:$0xff]  ;;  %v388_v21 = vpack.c.bf16 %v72_v17, %v71_v16  ;;  %v73_v22 = vld [vmem:[#allocation6 + $0x40] sm:$0xff]  ;;  %v166_v25 = vld [vmem:[#allocation8 + $0x30] sm:$0xff] }
  0x3c   :  { %404 = vmatpush3.bf16.msra.mxu1 %v403_v15  ;;  %v74_v23 = vld [vmem:[#allocation6 + $0x48] sm:$0xff]  ;;  %v409_v24 = vpack.c.bf16 %v165_v20, %v164_v19  ;;  %v167_v26 = vld [vmem:[#allocation8 + $0x38] sm:$0xff]  ;;  %v75_v28 = vld [vmem:[#allocation6 + $0x50] sm:$0xff] }
  0x3d   :  { %405 = vmatprep.subr.bf16.mxu1 %v538_v0  ;;  %v391_v27 = vpack.c.bf16 %v74_v23, %v73_v22  ;;  %v76_v29 = vld [vmem:[#allocation6 + $0x58] sm:$0xff]  ;;  %v412_v30 = vpack.c.bf16 %v167_v26, %v166_v25  ;;  %v168_v31 = vld [vmem:[#allocation8 + $0x40] sm:$0xff]  ;;  %v169_v32 = vld [vmem:[#allocation8 + $0x48] sm:$0xff] }
  0x3e   :  { %383 = vmatpush3.bf16.msra.mxu0 %v382_v7  ;;  %v394_v33 = vpack.c.bf16 %v76_v29, %v75_v28  ;;  %v77_v34 = vld [vmem:[#allocation6 + $0x60] sm:$0xff]  ;;  %v78_v35 = vld [vmem:[#allocation6 + $0x68] sm:$0xff]  ;;  %v415_v36 = vpack.c.bf16 %v169_v32, %v168_v31  ;;  %v79_v38 = vld [vmem:[#allocation6 + $0x70] sm:$0xff] }
  0x3f   :  { %384 = vmatprep.subr.bf16.mxu0 %v538_v0  ;;  %v397_v37 = vpack.c.bf16 %v78_v35, %v77_v34  ;;  %v80_v39 = vld [vmem:[#allocation6 + $0x78] sm:$0xff]  ;;  %v170_v42 = vld [vmem:[#allocation8 + $0x50] sm:$0xff]  ;;  %v172_v45 = vld [vmem:[#allocation8 + $0x60] sm:$0xff] }
  0x40   :  { %407 = vmatpush3.bf16.msra.mxu1 %v406_v18  ;;  %v400_v40 = vpack.c.bf16 %v80_v39, %v79_v38  ;;  %v64_v41 = vld [vmem:[#allocation3] sm:$0xff]  ;;  %v173_v46 = vld [vmem:[#allocation8 + $0x68] sm:$0xff]  ;;  %v174_v48 = vld [vmem:[#allocation8 + $0x70] sm:$0xff] }
  0x41   :  { %408 = vmatprep.subr.bf16.mxu1 %v538_v0  ;;  %v171_v43 = vld [vmem:[#allocation8 + $0x58] sm:$0xff]  ;;  %v421_v47 = vpack.c.bf16 %v173_v46, %v172_v45 }
  0x42   :  { %386 = vmatpush3.bf16.msra.mxu0 %v385_v14  ;;  %v418_v44 = vpack.c.bf16 %v171_v43, %v170_v42  ;;  %v175_v49 = vld [vmem:[#allocation8 + $0x78] sm:$0xff] }
  0x43   :  { %387 = vmatprep.subr.bf16.mxu0 %v538_v0  ;;  %v424_v50 = vpack.c.bf16 %v175_v49, %v174_v48  ;;  %v272_v51 = vld [vmem:[%s650_s2] ss:$0 sm:$0xff]  ;;  %s505_s2 = scalar_lea.vmem %s263_s8, 128 }
  0x44   :  { %410 = vmatpush3.bf16.msra.mxu1 %v409_v24  ;;  %v273_v56 = vld [vmem:[%s652_s4] ss:$0 sm:$0xff]  ;;  %p506_p10 = scmp.ne.s32.totalorder %s263_s8, %s505_s2  ;;  %p511_p12 = scmp.lt.s32.totalorder %s505_s2, %s505_s2 }
  0x45   :  { %411 = vmatprep.subr.bf16.mxu1 %v538_v0 }
  0x46   :  { %389 = vmatpush3.bf16.msra.mxu0 %v388_v21  ;;  %p512_p13 = por %p511_p12, %p510_p11 }
  0x47   :  { %390 = vmatprep.subr.bf16.mxu0 %v538_v0 }
  0x48   :  { %413 = vmatpush3.bf16.msra.mxu1 %v412_v30  ;;  %p513_p0 = pnand %p512_p13, %p506_p10 }
  0x49   :  { %414 = vmatprep.subr.bf16.mxu1 %v538_v0 }
  0x4a   :  { %392 = vmatpush3.bf16.msra.mxu0 %v391_v27 }
  0x4b   :  { %393 = vmatprep.subr.bf16.mxu0 %v538_v0 }
  0x4c   :  { %416 = vmatpush3.bf16.msra.mxu1 %v415_v36 }
  0x4d   :  { %417 = vmatprep.subr.bf16.mxu1 %v538_v0 }
  0x4e   :  { %395 = vmatpush3.bf16.msra.mxu0 %v394_v33 }
  0x4f   :  { %396 = vmatprep.subr.bf16.mxu0 %v538_v0 }
  0x50   :  { %419 = vmatpush3.bf16.msra.mxu1 %v418_v44 }
  0x51   :  { %420 = vmatprep.subr.bf16.mxu1 %v538_v0 }
  0x52   :  { %398 = vmatpush3.bf16.msra.mxu0 %v397_v37 }
  0x53   :  { %399 = vmatprep.subr.bf16.mxu0 %v538_v0 }
  0x54   :  { %422 = vmatpush3.bf16.msra.mxu1 %v421_v47 }
  0x55   :  { %423 = vmatprep.subr.bf16.mxu1 %v538_v0 }
  0x56   :  { %401 = vmatpush3.bf16.msra.mxu0 %v400_v40 }
  0x58   :  { %425 = vmatpush3.bf16.msra.mxu1 %v424_v50 }
  0x59   :  { %341 = vmatmul.mubr.f32.vlgmr.msra.gmra.mrb[0].mxu0 %v64_v41 }
 0x12c   :  { %v154_v52 = vpop.f32.mrb[0].mxu0 }
 0x12d   :  { %v155_v53 = vadd.f32 %v272_v51, %v154_v52  ;;  %v342_v54 = vpop.f32.mrb[1].mxu0 }
 0x12f   :  { %435 = vtanh.f32 %v155_v53 }
 0x139   :  { %v436_v55 = vpop.eup %435 }
 0x13a   :  { %376 = vmatmul.mubr.f32.vlgmr.msra.gmra.mrb[0].mxu1 %v436_v55 }
 0x20d   :  { %v250_v57 = vpop.f32.mrb[0].mxu1 }
 0x20e   :  { %v251_v58 = vadd.f32 %v273_v56, %v250_v57  ;;  %v377_v59 = vpop.f32.mrb[1].mxu1 }
 0x210   :  { %437 = vtanh.f32 %v251_v58 }
 0x21a   :  { %v438_v60 = vpop.eup %437 }
 0x21b   :  { %255 = vst [vmem:[#allocation9] sm:$0xff] %v438_v60 }
 0x21c   :  { %516 = shalt.err (!%p513_p0)
}
 0x21d   :  { %s517_s4 = scalar_lea.hbm %s653_s5, 128 }
 0x21e   :  { %p518_p1 = scmp.ne.s32.totalorder %s653_s5, %s517_s4  ;;  %p521_p2 = scmp.lt.u32.totalorder %s517_s4, %s653_s5 }
 0x220   :  { %p523_p3 = pnand %p521_p2, %p518_p1 }
 0x222   :  { %526 = shalt.err (!%p523_p3)
}
 0x223   :  { %265 = dma.vmem_to_hbm [thread:$0]  %s263_s8, 128, %s653_s5, [#allocation5]  }
 0x224   :  { %531 = dma.done.wait [#allocation5], 128  }
 0x225   :  { %532 = vsyncadd [#allocation5], 4294967168 }
 0x226   :  { %269 = vsyncpa [#allocation4], 1 }
 0x227   :  { %270 = vsyncpa [#allocation7], 1 }
 0x228   :  { %271 = vsyncpa [#allocation5], 1 }

</bundles_post_ra>
